<compile_context>
chip_gen: v6e
topology: v6e:2x2x1
jax: 0.10.0
libtpu: 0.0.40
codegen_flags: <defaults>
</compile_context>

<pallas_src>
import functools

import jax
import jax.numpy as jnp
from jax.experimental import pallas as pl
from jax.experimental.pallas import tpu as pltpu

# Budget for the three double-buffered input blocks (conservative enough for
# every TPU generation, including v7x's 64 MiB physical VMEM).
_INPUT_DB_BUDGET_BYTES = 24 << 20


def _triplet_kernel(a_ref, p_ref, n_ref, o_ref, acc_ref, *, margin, inv_total_rows):
    step = pl.program_id(1)  # inner "arbitrary" (reduction) axis

    # Per-row hinge accumulator lives in VMEM scratch; re-init at the start of
    # each core's stream of batch tiles.
    @pl.when(step == 0)
    def _():
        acc_ref[...] = jnp.zeros_like(acc_ref)

    a = a_ref[...].astype(jnp.float32)
    p = p_ref[...].astype(jnp.float32)
    n = n_ref[...].astype(jnp.float32)

    dpos = a - p
    dneg = a - n
    dp = jnp.sum(dpos * dpos, axis=1, keepdims=True)   # (tile_b, 1) lane reduce
    dn = jnp.sum(dneg * dneg, axis=1, keepdims=True)   # (tile_b, 1)

    # Per-row hinge; only an elementwise VPU add on the per-step critical path.
    acc_ref[...] += jnp.maximum(dp - dn + margin, 0.0)

    # Epilogue: single cross-sublane reduce + mean scaling, once per core.
    @pl.when(step == pl.num_programs(1) - 1)
    def _():
        o_ref[...] = (jnp.sum(acc_ref[...]) * inv_total_rows).reshape(1, 1, 1)


def triplet_loss(anchor, positive, negative, *, margin=1.0, tile_b=None,
                 num_parallel=None):
    """mean(relu(||a-p||^2 - ||a-n||^2 + margin)) via a Pallas TPU kernel."""
    B, D = anchor.shape
    assert positive.shape == (B, D) and negative.shape == (B, D)
    assert B % 8 == 0, "batch must be a multiple of 8 (sublane constraint)"

    # Split the batch across two TensorCores (v7x megacore) when divisibility
    # allows; on single-core chips this is just a serial outer loop.
    if num_parallel is None:
        num_parallel = 2 if (B % 16 == 0 and B >= 16) else 1
    per_core = B // num_parallel

    if tile_b is None:
        # Largest tile (multiple of 8, divides per_core, capped at 1024 rows)
        # whose double-buffered input blocks fit the VMEM budget.
        bytes_per_row = 3 * 2 * D * 4            # 3 inputs x 2 buffers, f32
        max_rows = max(8, (_INPUT_DB_BUDGET_BYTES // bytes_per_row) // 8 * 8)
        max_rows = min(max_rows, 1024)
        cap = min(per_core, max_rows)
        tile_b = 8
        for t in range(cap, 7, -8):
            if per_core % t == 0:
                tile_b = t
                break
    assert tile_b % 8 == 0, "tile_b must be a multiple of 8"
    assert per_core % tile_b == 0, "per-core batch must be divisible by tile_b"
    steps = per_core // tile_b

    # Scoped-VMEM limit sized to the actual footprint + headroom (kept well
    # under v7x's 64 MiB physical VMEM).
    input_buf_bytes = 3 * 2 * tile_b * D * 4
    scratch_bytes = tile_b * 128 * 4             # (tile_b, 1) pads to lane width
    vmem_limit = min(input_buf_bytes + scratch_bytes + (8 << 20), 48 << 20)
    vmem_limit = max(vmem_limit, 16 << 20)

    kernel = functools.partial(
        _triplet_kernel, margin=float(margin), inv_total_rows=1.0 / float(B)
    )

    in_spec = pl.BlockSpec((tile_b, D), lambda c, i: (c * steps + i, 0))

    partials = pl.pallas_call(
        kernel,
        out_shape=jax.ShapeDtypeStruct((num_parallel, 1, 1), jnp.float32),
        grid_spec=pltpu.PrefetchScalarGridSpec(
            num_scalar_prefetch=0,
            grid=(num_parallel, steps),
            in_specs=[in_spec, in_spec, in_spec],
            out_specs=pl.BlockSpec((1, 1, 1), lambda c, i: (c, 0, 0)),
            scratch_shapes=[pltpu.VMEM((tile_b, 1), jnp.float32)],
        ),
        compiler_params=pltpu.CompilerParams(
            dimension_semantics=("parallel", "arbitrary"),
            vmem_limit_bytes=vmem_limit,
        ),
    )(anchor, positive, negative)

    # Each core's partial already carries the 1/B factor; sum them.
    return jnp.sum(partials)


if __name__ == "__main__":
    key = jax.random.PRNGKey(0)
    ka, kp, kn = jax.random.split(key, 3)

    B, D = 64, 128  # small demo shapes (B % 8 == 0)
    anchor = jax.random.normal(ka, (B, D), dtype=jnp.float32)
    positive = jax.random.normal(kp, (B, D), dtype=jnp.float32)
    negative = jax.random.normal(kn, (B, D), dtype=jnp.float32)

    loss = triplet_loss(anchor, positive, negative, margin=1.0)
    loss = jax.block_until_ready(loss)

    # Pure-JAX reference (same math as the PyTorch module).
    dp = jnp.sum((anchor - positive) ** 2, axis=1)
    dn = jnp.sum((anchor - negative) ** 2, axis=1)
    ref = jnp.mean(jnp.maximum(dp - dn + 1.0, 0.0))
    assert jnp.allclose(loss, ref, rtol=1e-5, atol=1e-5), (loss, ref)

    print("KERNEL_OK")
</pallas_src>

<mosaic_0001>
module attributes {stable_mosaic.version = 11 : i64} {
  func.func @_triplet_kernel(%arg0: i32, %arg1: i32, %arg2: memref<32x128xf32, #tpu.memory_space<vmem>>, %arg3: memref<32x128xf32, #tpu.memory_space<vmem>>, %arg4: memref<32x128xf32, #tpu.memory_space<vmem>>, %arg5: memref<1x1x1xf32, #tpu.memory_space<vmem>>, %arg6: memref<32x1xf32, #tpu.memory_space<vmem>>) attributes {dimension_semantics = [#tpu.dimension_semantics<parallel>, #tpu.dimension_semantics<arbitrary>], iteration_bounds = array<i64: 2, 1>, scalar_prefetch = 0 : i64, scratch_operands = 1 : i64, tpu.core_type = #tpu.core_type<tc>, window_params = [{transform_indices = @transform_0, window_bounds = array<i64: 32, 128>}, {transform_indices = @transform_1, window_bounds = array<i64: 32, 128>}, {transform_indices = @transform_2, window_bounds = array<i64: 32, 128>}, {transform_indices = @transform_3, window_bounds = array<i64: 1, 1, 1>}]} {
    %c0_i32 = arith.constant 0 : i32
    %0 = arith.cmpi eq, %arg1, %c0_i32 : i32
    %1 = arith.extui %0 : i1 to i32
    %c0_i32_0 = arith.constant 0 : i32
    %2 = arith.cmpi ne, %1, %c0_i32_0 : i32
    scf.if %2 {
      %cst_15 = arith.constant 0.000000e+00 : f32
      %25 = vector.broadcast %cst_15 : f32 to vector<32x1xf32>
      %c0_16 = arith.constant 0 : index
      %c0_17 = arith.constant 0 : index
      %26 = vector.load %arg6[%c0_16, %c0_17] : memref<32x1xf32, #tpu.memory_space<vmem>>, vector<32x1xf32>
      tpu.vector_store %arg6[%c0_16, %c0_17], %25 {strides = array<i32>} : memref<32x1xf32, #tpu.memory_space<vmem>>, vector<32x1xf32>,
    } else {
    }
    %c0 = arith.constant 0 : index
    %c0_1 = arith.constant 0 : index
    %3 = vector.load %arg2[%c0, %c0_1] : memref<32x128xf32, #tpu.memory_space<vmem>>, vector<32x128xf32>
    %c0_2 = arith.constant 0 : index
    %c0_3 = arith.constant 0 : index
    %4 = vector.load %arg3[%c0_2, %c0_3] : memref<32x128xf32, #tpu.memory_space<vmem>>, vector<32x128xf32>
    %c0_4 = arith.constant 0 : index
    %c0_5 = arith.constant 0 : index
    %5 = vector.load %arg4[%c0_4, %c0_5] : memref<32x128xf32, #tpu.memory_space<vmem>>, vector<32x128xf32>
    %6 = arith.subf %3, %4 : vector<32x128xf32>
    %7 = arith.subf %3, %5 : vector<32x128xf32>
    %8 = arith.mulf %6, %6 : vector<32x128xf32>
    %cst = arith.constant dense<0.000000e+00> : vector<32xf32>
    %9 = vector.multi_reduction <add>, %8, %cst [1] : vector<32x128xf32> to vector<32xf32>
    %10 = vector.shape_cast %9 : vector<32xf32> to vector<32x1xf32>
    %11 = arith.mulf %7, %7 : vector<32x128xf32>
    %cst_6 = arith.constant dense<0.000000e+00> : vector<32xf32>
    %12 = vector.multi_reduction <add>, %11, %cst_6 [1] : vector<32x128xf32> to vector<32xf32>
    %13 = vector.shape_cast %12 : vector<32xf32> to vector<32x1xf32>
    %c0_7 = arith.constant 0 : index
    %c0_8 = arith.constant 0 : index
    %14 = vector.load %arg6[%c0_7, %c0_8] : memref<32x1xf32, #tpu.memory_space<vmem>>, vector<32x1xf32>
    %15 = arith.subf %10, %13 : vector<32x1xf32>
    %cst_9 = arith.constant 1.000000e+00 : f32
    %16 = vector.broadcast %cst_9 : f32 to vector<32x1xf32>
    %17 = arith.addf %15, %16 : vector<32x1xf32>
    %cst_10 = arith.constant 0.000000e+00 : f32
    %18 = vector.broadcast %cst_10 : f32 to vector<32x1xf32>
    %19 = arith.maximumf %17, %18 : vector<32x1xf32>
    %20 = arith.addf %14, %19 : vector<32x1xf32>
    %c0_11 = arith.constant 0 : index
    %c0_12 = arith.constant 0 : index
    %21 = vector.load %arg6[%c0_11, %c0_12] : memref<32x1xf32, #tpu.memory_space<vmem>>, vector<32x1xf32>
    tpu.vector_store %arg6[%c0_11, %c0_12], %20 {strides = array<i32>} : memref<32x1xf32, #tpu.memory_space<vmem>>, vector<32x1xf32>,
    %c0_i32_13 = arith.constant 0 : i32
    %22 = arith.cmpi eq, %arg1, %c0_i32_13 : i32
    %23 = arith.extui %22 : i1 to i32
    %c0_i32_14 = arith.constant 0 : i32
    %24 = arith.cmpi ne, %23, %c0_i32_14 : i32
    scf.if %24 {
      %c0_15 = arith.constant 0 : index
      %c0_16 = arith.constant 0 : index
      %25 = vector.load %arg6[%c0_15, %c0_16] : memref<32x1xf32, #tpu.memory_space<vmem>>, vector<32x1xf32>
      %26 = vector.shape_cast %25 : vector<32x1xf32> to vector<1x32x1xf32>
      %cst_17 = arith.constant dense<0.000000e+00> : vector<1xf32>
      %27 = vector.multi_reduction <add>, %26, %cst_17 [1, 2] : vector<1x32x1xf32> to vector<1xf32>
      %28 = vector.shape_cast %27 : vector<1xf32> to vector<1x1x1xf32>
      %29 = vector.extract %28[0, 0, 0] : f32 from vector<1x1x1xf32>
      %cst_18 = arith.constant 1.562500e-02 : f32
      %30 = arith.mulf %29, %cst_18 : f32
      %31 = vector.broadcast %30 : f32 to vector<1x1x1xf32>
      %c0_19 = arith.constant 0 : index
      %c0_20 = arith.constant 0 : index
      %c0_21 = arith.constant 0 : index
      %32 = vector.load %arg5[%c0_19, %c0_20, %c0_21] : memref<1x1x1xf32, #tpu.memory_space<vmem>>, vector<1x1x1xf32>
      tpu.vector_store %arg5[%c0_19, %c0_20, %c0_21], %31 {strides = array<i32>} : memref<1x1x1xf32, #tpu.memory_space<vmem>>, vector<1x1x1xf32>,
    } else {
    }
    return
  }
  func.func @transform_0(%arg0: i32, %arg1: i32) -> (i32, i32) {
    %c1_i32 = arith.constant 1 : i32
    %0 = arith.muli %arg0, %c1_i32 : i32
    %1 = arith.addi %0, %arg1 : i32
    %c0_i32 = arith.constant 0 : i32
    %c0_i32_0 = arith.constant 0 : i32
    return %1, %c0_i32 : i32, i32
  }
  func.func @transform_1(%arg0: i32, %arg1: i32) -> (i32, i32) {
    %c1_i32 = arith.constant 1 : i32
    %0 = arith.muli %arg0, %c1_i32 : i32
    %1 = arith.addi %0, %arg1 : i32
    %c0_i32 = arith.constant 0 : i32
    %c0_i32_0 = arith.constant 0 : i32
    return %1, %c0_i32 : i32, i32
  }
  func.func @transform_2(%arg0: i32, %arg1: i32) -> (i32, i32) {
    %c1_i32 = arith.constant 1 : i32
    %0 = arith.muli %arg0, %c1_i32 : i32
    %1 = arith.addi %0, %arg1 : i32
    %c0_i32 = arith.constant 0 : i32
    %c0_i32_0 = arith.constant 0 : i32
    return %1, %c0_i32 : i32, i32
  }
  func.func @transform_3(%arg0: i32, %arg1: i32) -> (i32, i32, i32) {
    %c0_i32 = arith.constant 0 : i32
    %c0_i32_0 = arith.constant 0 : i32
    %c0_i32_1 = arith.constant 0 : i32
    return %arg0, %c0_i32, %c0_i32_0 : i32, i32, i32
  }
}

</mosaic_0001>

<bundles_post_ra>
// kernel: tpu_custom_call.1
= control target key start
LH: loop header
LB: loop body
LE: loop exit
PB: predicated region body
PF: predicated region fallthrough
CT: control target
= control target key end

     0   :  { %8 = vsyncpa [#allocation4], 0  ;;  %s932_s0 = inlined_call_operand.hbm [shape: f32[64,128], index: 0, kind: input, shape index: {}]   ;;  %s933_s1 = inlined_call_operand.hbm [shape: f32[64,128], index: 1, kind: input, shape index: {}]   ;;  %s934_s2 = inlined_call_operand.hbm [shape: f32[64,128], index: 2, kind: input, shape index: {}]   ;;  %s935_s3 = inlined_call_operand.vmem [shape: f32[2,1,1], index: 3, kind: output, shape index: {}]  }
   0x1   :  { %10 = vsyncpa [#allocation4 + $0x1], 0 }
   0x2   :  { %11 = vsyncpa [#allocation6], 0 }
   0x3   :  { %13 = vsyncpa [#allocation6 + $0x1], 0  ;;  %s767_s12 = smov 0   ;;  %s769_s13 = smov 0  }
   0x4   :  { %s771_s14 = smov 0   ;;  %s773_s15 = smov 0  }
   0x5   :  { %s775_s16 = smov 0   ;;  %s777_s17 = smov 0  }
   0x6 LB: > { %s936_s18 = sadd.s32 4294967295, %s739_s17   ;;  %s31_s19 = sadd.s32 1, %s735_s16  ;;  %s739_s17 = sphi %s777_s17, %s19_s17   ;;  %s735_s16 = sphi %s775_s16, %s945_s16   ;;  %s731_s15 = sphi %s773_s15, %s944_s15   ;;  %s727_s14 = sphi %s771_s14, %s943_s14   ;;  %s723_s13 = sphi %s769_s13, %s942_s13   ;;  %s719_s12 = sphi %s767_s12, %s941_s12  }
   0x7   : > { %p33_p0 = scmp.ge.s32.totalorder %s31_s19, 2  ;;  %s40_s20 = sadd.s32 1, %s727_s14 }
   0x8   : > { %p47_p1 = scmp.ne.s32.totalorder %s727_s14, %s723_s13  ;;  %p48_p2 = scmp.eq.s32.totalorder %s739_s17, 0 }
   0x9   : > { %s947_s19 = smov (%p33_p0, %s31_s19), 0  ;;  %p53_p4 = scmp.ne.s32.totalorder %s723_s13, %s719_s12 }
   0xa   : > { %p49_p3 = por %p48_p2, %p47_p1  ;;  %s37_s21 = ssub.s32 %s735_s16, %s947_s19 }
   0xb   : > { %p54_p5 = scmp.eq.s32.totalorder %s936_s18, 0  ;;  %p38_p6 = scmp.eq.s32.totalorder %s37_s21, 0 }
   0xc   : > { %p549_p8 = scmp.lt.s32.totalorder %s739_s17, 2  ;;  %s159_s24 = sand.u32 1, %s727_s14  }
   0xd   : > { %p808_p7 = por %p54_p5, %p53_p4  ;;  %s818_s25 = sshll.u32 %s735_s16, 9 }
   0xe   : > { %s814_s23 = scalar_select %p38_p6, %s727_s14, %s40_s20  }
   0xf   : > { %s822_s26 = sshll.u32 %s159_s24, 5  ;;  %p824_p9 = pnand %p549_p8, %p49_p3 }
  0x10   : > { %s181_s28 = sand.u32 1, %s739_s17   ;;  %s192_s4 = scalar_lea.hbm %s933_s1, %s818_s25 }
  0x11   : > { %s185_s5 = scalar_lea.vmem [#allocation5], %s822_s26  ;;  %p522_p10 = scmp.ge.s32.totalorder %s739_s17, 1 }
  0x12   : > { %s193_s6 = sshll.u32 %s185_s5, 4  ;;  %s835_s7 = scalar_lea.sflag [#allocation6], %s181_s28  ;;  %s194_s6 = int_to_ptr.vmem [resolvable:$true] %s193_s6 }
  0x13   : > { %p603_p11 = pneg %p824_p9  ;;  %s614_s8 = scalar_lea.vmem %s194_s6, 512 }
  0x14   : > { %p615_p12 = scmp.ne.s32.totalorder %s194_s6, %s614_s8  ;;  %s741_s9 = smov [#allocation5]  }
  0x15   : > { %s619_s10 = sshll.u32 %s741_s9, 4  ;;  %s620_s10 = int_to_ptr.vmem [resolvable:$false] %s619_s10 }
  0x16   : > { %p617_p13 = pnand %p615_p12, %p603_p11  ;;  %s621_s11 = scalar_lea.vmem %s620_s10, 1024 }
  0x17   : > { %p622_p1 = scmp.lt.s32.totalorder %s194_s6, %s620_s10  ;;  %p623_p2 = scmp.lt.s32.totalorder %s621_s11, %s614_s8 }
  0x18   : > { %p618_p0 = pneg %p617_p13 }
  0x19   : > { %p624_p3 = por %p623_p2, %p622_p1 }
  0x1b   : > { %p625_p4 = pnand %p624_p3, %p618_p0 }
  0x1d   : > { %628 = shalt.err (!%p625_p4)
}
  0x1e   : > { %s742_s12 = smov 128   ;;  %s743_s20 = smov 8  }
  0x1f   : > { %545 = dma.hbm_to_vmem [thread:$0]  (!%p824_p9), %s192_s4, 512, %s194_s6, %s835_s7, %s742_s12, %s742_s12, %s743_s20  }
  0x20   : > { %p223_p5 = scmp.lt.s32.totalorder %s739_s17, 3  ;;  %s170_s30 = scalar_lea.hbm %s932_s0, %s818_s25 }
  0x21   : > { %s163_s5 = scalar_lea.vmem [#allocation3], %s822_s26  ;;  %s160_s9 = scalar_lea.sflag [#allocation4], %s159_s24 }
  0x22   : > { %p851_p6 = pnand %p522_p10, %p223_p5  ;;  %s171_s8 = sshll.u32 %s163_s5, 4  ;;  %s172_s8 = int_to_ptr.vmem [resolvable:$true] %s171_s8 }
  0x23   : > { %s642_s10 = scalar_lea.vmem %s172_s8, 512  ;;  %s744_s4 = smov [#allocation3]  }
  0x24   : > { %p643_p8 = scmp.ne.s32.totalorder %s172_s8, %s642_s10  ;;  %s647_s6 = sshll.u32 %s744_s4, 4  ;;  %s648_s6 = int_to_ptr.vmem [resolvable:$false] %s647_s6 }
  0x25   : > { %s649_s11 = scalar_lea.vmem %s648_s6, 1024  ;;  %p650_p10 = scmp.lt.s32.totalorder %s172_s8, %s648_s6 }
  0x26   : > { %p645_p12 = pnand %p643_p8, %p603_p11  ;;  %p651_p0 = scmp.lt.s32.totalorder %s649_s11, %s642_s10 }
  0x28   : > { %p646_p13 = pneg %p645_p12  ;;  %p652_p1 = por %p651_p0, %p650_p10 }
  0x2a   : > { %p653_p2 = pnand %p652_p1, %p646_p13 }
  0x2c   : > { %656 = shalt.err (!%p653_p2)
}
  0x2d   : > { %542 = dma.hbm_to_vmem [thread:$0]  (!%p824_p9), %s170_s30, 512, %s172_s8, %s160_s9, %s742_s12, %s742_s12, %s743_s20  }
  0x2e   : > { %s214_s29 = scalar_lea.hbm %s934_s2, %s818_s25  ;;  %s207_s5 = scalar_lea.vmem [#allocation7], %s822_s26 }
  0x2f   : > { %s215_s4 = sshll.u32 %s207_s5, 4  ;;  %s745_s6 = smov [#allocation7]   ;;  %s216_s4 = int_to_ptr.vmem [resolvable:$true] %s215_s4 }
  0x30   : > { %s670_s10 = scalar_lea.vmem %s216_s4, 512  ;;  %s675_s11 = sshll.u32 %s745_s6, 4  ;;  %s676_s11 = int_to_ptr.vmem [resolvable:$false] %s675_s11 }
  0x31   : > { %p671_p3 = scmp.ne.s32.totalorder %s216_s4, %s670_s10  ;;  %s677_s18 = scalar_lea.vmem %s676_s11, 1024 }
  0x32   : > { %p678_p8 = scmp.lt.s32.totalorder %s216_s4, %s676_s11  ;;  %p679_p12 = scmp.lt.s32.totalorder %s677_s18, %s670_s10 }
  0x33   : > { %p673_p4 = pnand %p671_p3, %p603_p11 }
  0x34   : > { %p680_p13 = por %p679_p12, %p678_p8 }
  0x35   : > { %p674_p5 = pneg %p673_p4 }
  0x37   : > { %p681_p10 = pnand %p680_p13, %p674_p5 }
  0x39   : > { %684 = shalt.err (!%p681_p10)
}
  0x3a   : > { %548 = dma.hbm_to_vmem [thread:$0]  (!%p824_p9), %s214_s29, 512, %s216_s4, %s835_s7, %s742_s12, %s742_s12, %s743_s20  }
  0x3b   : > { %227 = sbr.rel (%p851_p6) target bundleno = 449 (0x1c1), region = 32  ;;  %s229_s25 = sand.u32 (!%p851_p6), 1, %s723_s13  }
  0x3c   : > { %s523_s26 = sshll.u32 (!%p851_p6), %s229_s25, 5  ;;  %s230_s30 = scalar_lea.sflag (!%p851_p6), [#allocation4], %s229_s25 }
  0x3d   : > { %s233_s8 = scalar_lea.vmem (!%p851_p6), [#allocation3], %s523_s26 }
  0x40   : > { %710 = dma.done.wait (%p808_p7), %s230_s30, 512  }
  0x41   : > { %712 = vsyncadd (%p808_p7), %s230_s30, 4294966784  ;;  %s940_s18 = sadd.s32 4294967295, %s739_s17   ;;  %s242_s7 = scalar_lea.vmem [#allocation5], %s523_s26 }
  0x42   : > { %s238_s27 = sand.u32 1, %s940_s18  }
  0x43   : > { %s239_s9 = scalar_lea.sflag [#allocation6], %s238_s27 }
  0x44   : > { %714 = dma.done.wait (%p808_p7), %s239_s9, 1024  }
  0x45   : > { %716 = vsyncadd (%p808_p7), %s239_s9, 4294966272  ;;  %v300_v0 = vld [vmem:[%s233_s8] sm:$0xff]  ;;  %s251_s12 = scalar_lea.vmem [#allocation7], %s523_s26  ;;  %v301_v5 = vld [vmem:[%s233_s8 + $0x8] sm:$0xff]  ;;  %vm295_vm0 = vcmask 7168   ;;  %v746_v28 = vmov 0.0  }
  0x46   : > { %v308_v1 = vld [vmem:[%s251_s12] sm:$0xff]  ;;  %v309_v6 = vld [vmem:[%s251_s12 + $0x8] sm:$0xff]  ;;  %v302_v10 = vld [vmem:[%s233_s8 + $0x10] sm:$0xff]  ;;  %296 = vst.msk [vmem:[#allocation2] sm:$0xff] %vm295_vm0, %v746_v28  ;;  %p288_p7 = scmp.lt.s32.totalorder %s731_s15, 1  ;;  %vm394_vm1 = vcmask 0  }
  0x47   : > { %v304_v2 = vld [vmem:[%s242_s7] sm:$0xff]  ;;  %v316_v3 = vsub.f32 %v300_v0, %v308_v1  ;;  %v305_v7 = vld [vmem:[%s242_s7 + $0x8] sm:$0xff]  ;;  %v317_v8 = vsub.f32 %v301_v5, %v309_v6  ;;  %v310_v11 = vld [vmem:[%s251_s12 + $0x10] sm:$0xff]  ;;  %297 = vst.msk [vmem:[#allocation2 + $0x8] sm:$0xff] %vm295_vm0, %v746_v28 }
  0x48   : > { %v312_v4 = vsub.f32 %v300_v0, %v304_v2  ;;  %v313_v9 = vsub.f32 %v301_v5, %v305_v7  ;;  %v306_v12 = vld [vmem:[%s242_s7 + $0x10] sm:$0xff]  ;;  %v318_v15 = vsub.f32 %v302_v10, %v310_v11  ;;  %v303_v19 = vld [vmem:[%s233_s8 + $0x18] sm:$0xff]  ;;  %298 = vst.msk [vmem:[#allocation2 + $0x10] sm:$0xff] %vm295_vm0, %v746_v28  ;;  %299 = vst.msk [vmem:[#allocation2 + $0x18] sm:$0xff] %vm295_vm0, %v746_v28  ;;  %s949_s15 = smov (!%p288_p7, %s731_s15), 1 }
  0x49   : > { %v332_v13 = vmul.f32 %v316_v3, %v316_v3  ;;  %v333_v16 = vmul.f32 %v317_v8, %v317_v8  ;;  %v314_v18 = vsub.f32 %v302_v10, %v306_v12  ;;  %v311_v20 = vld [vmem:[%s251_s12 + $0x18] sm:$0xff]  ;;  %s290_s24 = scalar_lea.vmem %s935_s3, %s949_s15 }
  0x4a   : > { %v320_v14 = vmul.f32 %v312_v4, %v312_v4  ;;  %v321_v17 = vmul.f32 %v313_v9, %v313_v9  ;;  %v307_v21 = vld [vmem:[%s242_s7 + $0x18] sm:$0xff]  ;;  %v319_v22 = vsub.f32 %v303_v19, %v311_v20  ;;  %v334_v23 = vmul.f32 %v318_v15, %v318_v15 }
  0x4b   : > { %336 = vadd.xlane.f32.xlu1 %v332_v13  ;;  %v322_v24 = vmul.f32 %v314_v18, %v314_v18  ;;  %v315_v25 = vsub.f32 %v303_v19, %v307_v21 }
  0x4c   : > { %324 = vadd.xlane.f32.xlu0 %v320_v14  ;;  %v335_v26 = vmul.f32 %v319_v22, %v319_v22 }
  0x4d   : > { %v323_v27 = vmul.f32 %v315_v25, %v315_v25  ;;  %v344_v33 = vld [vmem:[#allocation2] sm:$0xff] }
  0x4e   : > { %v345_v40 = vld [vmem:[#allocation2 + $0x8] sm:$0xff] }
  0x4f   : > { %338 = vadd.xlane.f32.xlu1 %v333_v16  ;;  %v346_v47 = vld [vmem:[#allocation2 + $0x10] sm:$0xff]  ;;  %v347_v54 = vld [vmem:[#allocation2 + $0x18] sm:$0xff] }
  0x50   : > { %326 = vadd.xlane.f32.xlu0 %v321_v17 }
  0x53   : > { %340 = vadd.xlane.f32.xlu1 %v334_v23 }
  0x54   : > { %328 = vadd.xlane.f32.xlu0 %v322_v24 }
  0x57   : > { %342 = vadd.xlane.f32.xlu1 %v335_v26 }
  0x58   : > { %330 = vadd.xlane.f32.xlu0 %v323_v27 }
  0xd4   : > { %v337_v29 = vpop.xlane.xlu1 %336 }
  0xd5   : > { %v325_v30 = vpop.xlane.xlu0 %324 }
  0xd6   : > { %v348_v31 = vsub.f32 %v325_v30, %v337_v29 }
  0xd8   : > { %v352_v32 = vadd.f32 1.0, %v348_v31  ;;  %v339_v34 = vpop.xlane.xlu1 %338 }
  0xd9   : > { %v327_v35 = vpop.xlane.xlu0 %326 }
  0xda   : > { %v356_v36 = vmax.f32 %v352_v32, 0.0  ;;  %v349_v37 = vsub.f32 %v327_v35, %v339_v34 }
  0xdc   : > { %v360_v38 = vadd.f32 %v356_v36, %v344_v33  ;;  %v353_v39 = vadd.f32 1.0, %v349_v37  ;;  %v341_v41 = vpop.xlane.xlu1 %340 }
  0xdd   : > { %v329_v42 = vpop.xlane.xlu0 %328 }
  0xde   : > { %365 = vst.msk [vmem:[#allocation2] sm:$0xff] %vm295_vm0, %v360_v38  ;;  %v357_v43 = vmax.f32 %v353_v39, 0.0  ;;  %v350_v44 = vsub.f32 %v329_v42, %v341_v41 }
  0xe0   : > { %v361_v45 = vadd.f32 %v357_v43, %v345_v40  ;;  %v354_v46 = vadd.f32 1.0, %v350_v44  ;;  %v343_v48 = vpop.xlane.xlu1 %342 }
  0xe1   : > { %v331_v49 = vpop.xlane.xlu0 %330 }
  0xe2   : > { %366 = vst.msk [vmem:[#allocation2 + $0x8] sm:$0xff] %vm295_vm0, %v361_v45  ;;  %v358_v50 = vmax.f32 %v354_v46, 0.0  ;;  %v351_v51 = vsub.f32 %v331_v49, %v343_v48 }
  0xe4   : > { %v362_v52 = vadd.f32 %v358_v50, %v346_v47  ;;  %v355_v53 = vadd.f32 1.0, %v351_v51 }
  0xe5   : > { %v372_v58 = vld [vmem:[#allocation2] sm:$0xff] }
  0xe6   : > { %367 = vst.msk [vmem:[#allocation2 + $0x10] sm:$0xff] %vm295_vm0, %v362_v52  ;;  %v359_v55 = vmax.f32 %v355_v53, 0.0  ;;  %v376_v61 = vsel %vm295_vm0, %v372_v58, 0.0 }
  0xe8   : > { %v363_v56 = vadd.f32 %v359_v55, %v347_v54 }
  0xe9   : > { %v373_v57 = vld [vmem:[#allocation2 + $0x8] sm:$0xff] }
  0xea   : > { %368 = vst.msk [vmem:[#allocation2 + $0x18] sm:$0xff] %vm295_vm0, %v363_v56  ;;  %v377_v59 = vsel %vm295_vm0, %v373_v57, 0.0 }
  0xeb   : > { %v378_v63 = vadd.f32 %v377_v59, %v376_v61 }
  0xed   : > { %v374_v60 = vld [vmem:[#allocation2 + $0x10] sm:$0xff] }
  0xee   : > { %v379_v62 = vsel %vm295_vm0, %v374_v60, 0.0 }
  0xef   : > { %v380_v1 = vadd.f32 %v379_v62, %v378_v63 }
  0xf1   : > { %v375_v0 = vld [vmem:[#allocation2 + $0x18] sm:$0xff] }
  0xf2   : > { %v381_v2 = vsel %vm295_vm0, %v375_v0, 0.0 }
  0xf3   : > { %v382_v3 = vadd.f32 %v381_v2, %v380_v1 }
  0xf5   : > { %383 = vadd.xlane.f32.xlu0 %v382_v3 }
 0x17e   : > { %v384_v4 = vpop.xlane.xlu0 %383 }
 0x17f   : > { %v385_v5 = vrot.slane %v384_v4, 4 }
 0x181   : > { %v386_v6 = vadd.f32 %v385_v5, %v384_v4 }
 0x183   : > { %v387_v7 = vrot.slane %v386_v6, 2 }
 0x185   : > { %v388_v8 = vadd.f32 %v387_v7, %v386_v6 }
 0x187   : > { %v389_v9 = vrot.slane %v388_v8, 1 }
 0x189   : > { %v390_v10 = vadd.f32 %v389_v9, %v388_v8 }
 0x18b   : > { %531 = vpush %v390_v10 }
 0x1bc   : > { %s532_s22 = spop %531 }
 0x1bd   : > { %s392_s28 = smul.f32 0.015625, %s532_s22 }
 0x1bf   : > { %v393_v11 = vstv %s392_s28 }
 0x1c0   : > { %395 = vst.msk [vmem:[%s290_s24] sm:$0x1] %vm394_vm1, %v393_v11 }
 0x1c1 PF: > { %s19_s17 = sadd.s32 1, %s739_s17   ;;  %s941_s12 = smov %s723_s13 }
 0x1c2   : > { %p16_p9 = scmp.ge.s32.totalorder %s19_s17, 4   ;;  %s942_s13 = smov %s727_s14 }
 0x1c3   : > { %s943_s14 = smov %s814_s23  ;;  %s944_s15 = smov %s735_s16 }
 0x1c4   : > { %s945_s16 = smov %s947_s19  ;;  %18 = sbr.rel (!%p16_p9) target bundleno = 6 (0x6), region = 104 }
 0x1c9   :  { %413 = vsyncpa [#allocation4], 1 }
 0x1ca   :  { %415 = vsyncpa [#allocation4 + $0x1], 1 }
 0x1cb   :  { %416 = vsyncpa [#allocation6], 1 }
 0x1cc   :  { %418 = vsyncpa [#allocation6 + $0x1], 1 }

</bundles_post_ra>
